<compile_context>
chip_gen: v7x
topology: tpu7x:2x2x1
jax: 0.10.0
libtpu: 0.0.40
codegen_flags: <defaults>
</compile_context>

<pallas_src>
import functools

import jax
import jax.numpy as jnp
from jax import lax
from jax.experimental import pallas as pl
from jax.experimental.pallas import tpu as pltpu


def _round_up(x, m):
    return (x + m - 1) // m * m


def _gather_logits(idx_col, hi_ref, mid_ref, lo_ref, tn, vp):
    """One-hot bf16 MXU gather: returns (col_iota, logits) with
    logits[r, :] == (hi + mid + lo)[idx_col[r], :] to ~f32 roundoff."""
    col = lax.broadcasted_iota(jnp.int32, (tn, vp), 1)            # lane ids
    one_hot = (col == idx_col).astype(jnp.bfloat16)               # (TN, Vp), exact 0/1
    logits = jnp.dot(one_hot, hi_ref[...], preferred_element_type=jnp.float32)
    logits = logits + jnp.dot(one_hot, mid_ref[...], preferred_element_type=jnp.float32)
    logits = logits + jnp.dot(one_hot, lo_ref[...], preferred_element_type=jnp.float32)
    return col, logits


def _bigram_logits_kernel(idx_ref, hi_ref, mid_ref, lo_ref, logits_ref):
    # idx_ref: (TN, 1) int32; hi/mid/lo: (Vp, Vp) bf16 resident; logits: (TN, Vp) f32
    tn, vp = logits_ref.shape
    _, logits = _gather_logits(idx_ref[...], hi_ref, mid_ref, lo_ref, tn, vp)
    logits_ref[...] = logits


def _loss_body(io_ref, hi_ref, mid_ref, lo_ref, *, n_tokens):
    # io_ref: (TN, 2) int32 [idx | target]; hi/mid/lo: (Vp, Vp) bf16 resident.
    vp = hi_ref.shape[1]
    io = io_ref[...]
    tn = io.shape[0]
    idx_col = io[:, 0:1]
    tgt_col = io[:, 1:2]

    col, logits = _gather_logits(idx_col, hi_ref, mid_ref, lo_ref, tn, vp)

    # Padded vocab lanes carry -1e30 baked into the table -> no in-kernel mask.
    m = jnp.max(logits, axis=-1, keepdims=True)                    # (TN, 1)
    lse = jnp.log(jnp.sum(jnp.exp(logits - m), axis=-1, keepdims=True)) + m

    # target logit via select + lane reduce (targets never hit padded lanes)
    tgt_logit = jnp.sum(jnp.where(col == tgt_col, logits, 0.0),
                        axis=-1, keepdims=True)                    # (TN, 1)

    # mask padded token rows, one partial sum per block
    row = pl.program_id(0) * tn + lax.broadcasted_iota(jnp.int32, (tn, 1), 0)
    per_tok = jnp.where(row < n_tokens, lse - tgt_logit, 0.0)      # (TN, 1)
    return logits, jnp.sum(per_tok, axis=0, keepdims=True)         # (TN,Vp), (1,1)


def _bigram_loss_kernel(io_ref, hi_ref, mid_ref, lo_ref, logits_ref, loss_ref, *,
                        n_tokens):
    logits, part = _loss_body(io_ref, hi_ref, mid_ref, lo_ref, n_tokens=n_tokens)
    logits_ref[...] = logits
    loss_ref[...] = part.reshape(1, 1, 1)


def _bigram_loss_only_kernel(io_ref, hi_ref, mid_ref, lo_ref, loss_ref, *, n_tokens):
    _, part = _loss_body(io_ref, hi_ref, mid_ref, lo_ref, n_tokens=n_tokens)
    loss_ref[...] = part.reshape(1, 1, 1)


def prepare_bigram_params(emb_table):
    """Pad the (V, V) table to (Vp, Vp), bake the -1e30 vocab-lane mask into the
    padded columns, and split into three bf16 planes (hi + mid + lo ~= emb to
    ~f32 roundoff).  Call ONCE per parameter update, not per forward."""
    emb_table = jnp.asarray(emb_table, jnp.float32)
    V = emb_table.shape[0]
    Vp = _round_up(V, 128)
    emb = jnp.zeros((Vp, Vp), jnp.float32).at[:V, :V].set(emb_table)
    if Vp != V:
        emb = emb.at[:, V:].set(-1e30)        # mask padded vocab lanes in-table
    hi = emb.astype(jnp.bfloat16)
    r1 = emb - hi.astype(jnp.float32)
    mid = r1.astype(jnp.bfloat16)
    lo = (r1 - mid.astype(jnp.float32)).astype(jnp.bfloat16)
    return {"hi": hi, "mid": mid, "lo": lo, "vocab": V, "vocab_padded": Vp}


def bigram_forward(params, idx, targets=None, *, block_tokens=512,
                   return_logits=True):
    """Mirrors BigramLanguageModel.forward.

    params: dict from prepare_bigram_params (a raw (V, V) table is also accepted).
    Returns (logits, loss):
      targets is None -> logits (B, T, V), loss None
      else            -> logits (B*T, V) (or None if return_logits=False),
                         loss scalar (mean cross-entropy)
    """
    if not isinstance(params, dict):
        params = prepare_bigram_params(params)
    V, Vp = params["vocab"], params["vocab_padded"]
    hi, mid, lo = params["hi"], params["mid"], params["lo"]

    B, T = idx.shape
    N = B * T

    # Token block: multiple of 8, large by default; prefer >= 2 grid steps so the
    # "parallel" axis can shard across both TensorCores on v7x.
    TN = _round_up(min(block_tokens, N), 8)
    if N > 8 and _round_up(N, TN) // TN < 2:
        TN = _round_up((N + 1) // 2, 8)
    Np = _round_up(N, TN)
    num_blocks = Np // TN

    # Explicit VMEM budget: 3 single-buffered bf16 planes + double-buffered
    # logits blocks + tiny token blocks + slack.  Capped at 64 MiB (v7x per-TC
    # VMEM); for larger vocab switch to the HBM row-gather path (see TODO above).
    need_logits_out = (targets is None) or return_logits
    vmem_limit = (3 * Vp * Vp * 2
                  + (2 * TN * Vp * 4 if need_logits_out else 0)
                  + 2 * TN * 2 * 4
                  + 8 * TN * Vp * 4          # in-kernel temporaries headroom
                  + (2 << 20))
    compiler_params = pltpu.CompilerParams(
        dimension_semantics=("parallel",),
        vmem_limit_bytes=min(vmem_limit, 64 * 1024 * 1024))

    resident = pl.BlockSpec(memory_space=pltpu.MemorySpace.VMEM)   # single-buffered

    if targets is None:
        idx_flat = jnp.zeros((Np, 1), jnp.int32).at[:N, 0].set(
            idx.reshape(N).astype(jnp.int32))
        logits_pad = pl.pallas_call(
            _bigram_logits_kernel,
            grid_spec=pltpu.PrefetchScalarGridSpec(
                num_scalar_prefetch=0,
                grid=(num_blocks,),
                in_specs=[
                    pl.BlockSpec((TN, 1), lambda i: (i, 0)),
                    resident, resident, resident,
                ],
                out_specs=pl.BlockSpec((TN, Vp), lambda i: (i, 0)),
            ),
            out_shape=jax.ShapeDtypeStruct((Np, Vp), jnp.float32),
            compiler_params=compiler_params,
        )(idx_flat, hi, mid, lo)
        logits = logits_pad
        if Vp != V:
            logits = logits[:, :V]
        if Np != N:
            logits = logits[:N]
        return logits.reshape(B, T, V), None

    # merged idx|target input: one small DMA per grid step instead of two
    io = jnp.zeros((Np, 2), jnp.int32)
    io = io.at[:N, 0].set(idx.reshape(N).astype(jnp.int32))
    io = io.at[:N, 1].set(targets.reshape(N).astype(jnp.int32))

    if return_logits:
        kernel = functools.partial(_bigram_loss_kernel, n_tokens=N)
        logits_pad, loss_blocks = pl.pallas_call(
            kernel,
            grid_spec=pltpu.PrefetchScalarGridSpec(
                num_scalar_prefetch=0,
                grid=(num_blocks,),
                in_specs=[
                    pl.BlockSpec((TN, 2), lambda i: (i, 0)),
                    resident, resident, resident,
                ],
                out_specs=[
                    pl.BlockSpec((TN, Vp), lambda i: (i, 0)),
                    pl.BlockSpec((1, 1, 1), lambda i: (i, 0, 0)),
                ],
            ),
            out_shape=(
                jax.ShapeDtypeStruct((Np, Vp), jnp.float32),
                jax.ShapeDtypeStruct((num_blocks, 1, 1), jnp.float32),
            ),
            compiler_params=compiler_params,
        )(io, hi, mid, lo)
        logits = logits_pad
        if Vp != V:
            logits = logits[:, :V]
        if Np != N:
            logits = logits[:N]
        loss = jnp.sum(loss_blocks) / jnp.float32(N)
        return logits, loss

    # loss-only fast path: no (Np, Vp) f32 logits writeback at all
    kernel = functools.partial(_bigram_loss_only_kernel, n_tokens=N)
    loss_blocks = pl.pallas_call(
        kernel,
        grid_spec=pltpu.PrefetchScalarGridSpec(
            num_scalar_prefetch=0,
            grid=(num_blocks,),
            in_specs=[
                pl.BlockSpec((TN, 2), lambda i: (i, 0)),
                resident, resident, resident,
            ],
            out_specs=pl.BlockSpec((1, 1, 1), lambda i: (i, 0, 0)),
        ),
        out_shape=jax.ShapeDtypeStruct((num_blocks, 1, 1), jnp.float32),
        compiler_params=compiler_params,
    )(io, hi, mid, lo)
    loss = jnp.sum(loss_blocks) / jnp.float32(N)
    return None, loss


# TODO(synk): generate() (autoregressive torch.multinomial sampling loop) is a
# host-side control loop, not a kernel hot path; it is not implemented here.


def _reference_forward(emb_table, idx, targets):
    logits = emb_table[idx]                                   # (B, T, V)
    B, T, V = logits.shape
    lf = logits.reshape(B * T, V)
    tf = targets.reshape(B * T)
    lse = jax.nn.logsumexp(lf, axis=-1)
    tgt = jnp.take_along_axis(lf, tf[:, None], axis=-1)[:, 0]
    return lf, jnp.mean(lse - tgt)


if __name__ == "__main__":
    vocab_size = 65   # e.g. len(chars) for tiny-shakespeare
    B, T = 2, 8

    key = jax.random.PRNGKey(0)
    k_emb, k_idx, k_tgt = jax.random.split(key, 3)
    # nn.Embedding default init: N(0, 1)
    emb_table = jax.random.normal(k_emb, (vocab_size, vocab_size), jnp.float32)
    idx = jax.random.randint(k_idx, (B, T), 0, vocab_size, jnp.int32)
    targets = jax.random.randint(k_tgt, (B, T), 0, vocab_size, jnp.int32)

    # pad + mask + bf16-plane split happens ONCE here, not per forward call
    params = prepare_bigram_params(emb_table)

    logits, loss = bigram_forward(params, idx, targets)
    logits = jax.block_until_ready(logits)
    loss = jax.block_until_ready(loss)

    ref_logits, ref_loss = _reference_forward(emb_table, idx, targets)
    assert logits.shape == (B * T, vocab_size)
    assert jnp.allclose(logits, ref_logits, rtol=1e-4, atol=1e-4), "logits mismatch"
    assert jnp.allclose(loss, ref_loss, rtol=1e-4, atol=1e-4), "loss mismatch"

    # loss-only fast path (drops the big logits HBM writeback)
    _, loss_only = bigram_forward(params, idx, targets, return_logits=False)
    loss_only = jax.block_until_ready(loss_only)
    assert jnp.allclose(loss_only, ref_loss, rtol=1e-4, atol=1e-4), "loss-only mismatch"

    # no-target path: logits (B, T, V), loss None
    logits_nt, loss_nt = bigram_forward(params, idx, None)
    logits_nt = jax.block_until_ready(logits_nt)
    assert logits_nt.shape == (B, T, vocab_size) and loss_nt is None
    assert jnp.allclose(logits_nt.reshape(B * T, vocab_size), ref_logits,
                        rtol=1e-4, atol=1e-4), "no-target logits mismatch"

    print("KERNEL_OK")
</pallas_src>

<mosaic_0001>
module attributes {stable_mosaic.version = 11 : i64} {
  func.func @_bigram_loss_kernel(%arg0: i32, %arg1: memref<8x2xi32, #tpu.memory_space<vmem>>, %arg2: memref<128x128xbf16, #tpu.memory_space<vmem>>, %arg3: memref<128x128xbf16, #tpu.memory_space<vmem>>, %arg4: memref<128x128xbf16, #tpu.memory_space<vmem>>, %arg5: memref<8x128xf32, #tpu.memory_space<vmem>>, %arg6: memref<1x1x1xf32, #tpu.memory_space<vmem>>) attributes {dimension_semantics = [#tpu.dimension_semantics<parallel>], iteration_bounds = array<i64: 2>, scalar_prefetch = 0 : i64, scratch_operands = 0 : i64, tpu.core_type = #tpu.core_type<tc>, window_params = [{transform_indices = @transform_0, window_bounds = array<i64: 8, 2>}, {pipeline_mode = #tpu.pipeline_mode<synchronous>, transform_indices = @transform_1, window_bounds = array<i64: 128, 128>}, {pipeline_mode = #tpu.pipeline_mode<synchronous>, transform_indices = @transform_2, window_bounds = array<i64: 128, 128>}, {pipeline_mode = #tpu.pipeline_mode<synchronous>, transform_indices = @transform_3, window_bounds = array<i64: 128, 128>}, {transform_indices = @transform_4, window_bounds = array<i64: 8, 128>}, {transform_indices = @transform_5, window_bounds = array<i64: 1, 1, 1>}]} {
    %c0 = arith.constant 0 : index
    %c0_0 = arith.constant 0 : index
    %0 = vector.load %arg1[%c0, %c0_0] : memref<8x2xi32, #tpu.memory_space<vmem>>, vector<8x2xi32>
    %1 = vector.extract_strided_slice %0 {offsets = [0, 0], sizes = [8, 1], strides = [1, 1]} : vector<8x2xi32> to vector<8x1xi32>
    %2 = vector.extract_strided_slice %0 {offsets = [0, 1], sizes = [8, 1], strides = [1, 1]} : vector<8x2xi32> to vector<8x1xi32>
    %3 = tpu.iota {dimensions = array<i32: 1>} : vector<8x128xi32>
    %4 = vector.broadcast %1 : vector<8x1xi32> to vector<8x128xi32>
    %5 = arith.cmpi eq, %3, %4 : vector<8x128xi32>
    %6 = arith.extui %5 : vector<8x128xi1> to vector<8x128xi32>
    %7 = arith.sitofp %6 : vector<8x128xi32> to vector<8x128xf32>
    %8 = arith.truncf %7 : vector<8x128xf32> to vector<8x128xbf16>
    %c0_1 = arith.constant 0 : index
    %c0_2 = arith.constant 0 : index
    %9 = vector.load %arg2[%c0_1, %c0_2] : memref<128x128xbf16, #tpu.memory_space<vmem>>, vector<128x128xbf16>
    %cst = arith.constant dense<0.000000e+00> : vector<8x128xf32>
    %10 = tpu.matmul %8, %9, %cst {dimension_numbers = #tpu.dot_dimension_numbers<[1], [0], [0], [1], [0, 0, 1, 1], [], []>} : vector<8x128xbf16>, vector<128x128xbf16>, vector<8x128xf32> -> vector<8x128xf32>
    %c0_3 = arith.constant 0 : index
    %c0_4 = arith.constant 0 : index
    %11 = vector.load %arg3[%c0_3, %c0_4] : memref<128x128xbf16, #tpu.memory_space<vmem>>, vector<128x128xbf16>
    %cst_5 = arith.constant dense<0.000000e+00> : vector<8x128xf32>
    %12 = tpu.matmul %8, %11, %cst_5 {dimension_numbers = #tpu.dot_dimension_numbers<[1], [0], [0], [1], [0, 0, 1, 1], [], []>} : vector<8x128xbf16>, vector<128x128xbf16>, vector<8x128xf32> -> vector<8x128xf32>
    %13 = arith.addf %10, %12 : vector<8x128xf32>
    %c0_6 = arith.constant 0 : index
    %c0_7 = arith.constant 0 : index
    %14 = vector.load %arg4[%c0_6, %c0_7] : memref<128x128xbf16, #tpu.memory_space<vmem>>, vector<128x128xbf16>
    %cst_8 = arith.constant dense<0.000000e+00> : vector<8x128xf32>
    %15 = tpu.matmul %8, %14, %cst_8 {dimension_numbers = #tpu.dot_dimension_numbers<[1], [0], [0], [1], [0, 0, 1, 1], [], []>} : vector<8x128xbf16>, vector<128x128xbf16>, vector<8x128xf32> -> vector<8x128xf32>
    %16 = arith.addf %13, %15 : vector<8x128xf32>
    %cst_9 = arith.constant dense<0xFF800000> : vector<8xf32>
    %17 = vector.multi_reduction <maximumf>, %16, %cst_9 [1] : vector<8x128xf32> to vector<8xf32>
    %18 = vector.shape_cast %17 : vector<8xf32> to vector<8x1xf32>
    %19 = vector.broadcast %18 : vector<8x1xf32> to vector<8x128xf32>
    %20 = arith.subf %16, %19 : vector<8x128xf32>
    %21 = math.exp %20 : vector<8x128xf32>
    %cst_10 = arith.constant dense<0.000000e+00> : vector<8xf32>
    %22 = vector.multi_reduction <add>, %21, %cst_10 [1] : vector<8x128xf32> to vector<8xf32>
    %23 = vector.shape_cast %22 : vector<8xf32> to vector<8x1xf32>
    %24 = math.log %23 : vector<8x1xf32>
    %25 = arith.addf %24, %18 : vector<8x1xf32>
    %26 = vector.broadcast %2 : vector<8x1xi32> to vector<8x128xi32>
    %27 = arith.cmpi eq, %3, %26 : vector<8x128xi32>
    %cst_11 = arith.constant 0.000000e+00 : f32
    %28 = vector.broadcast %cst_11 : f32 to vector<8x128xf32>
    %29 = arith.select %27, %16, %28 : vector<8x128xi1>, vector<8x128xf32>
    %cst_12 = arith.constant dense<0.000000e+00> : vector<8xf32>
    %30 = vector.multi_reduction <add>, %29, %cst_12 [1] : vector<8x128xf32> to vector<8xf32>
    %31 = vector.shape_cast %30 : vector<8xf32> to vector<8x1xf32>
    %c8_i32 = arith.constant 8 : i32
    %32 = arith.muli %arg0, %c8_i32 : i32
    %33 = tpu.iota {dimensions = array<i32: 0>} : vector<8x1xi32>
    %34 = vector.broadcast %32 : i32 to vector<8x1xi32>
    %35 = arith.addi %34, %33 : vector<8x1xi32>
    %c16_i32 = arith.constant 16 : i32
    %36 = vector.broadcast %c16_i32 : i32 to vector<8x1xi32>
    %37 = arith.cmpi slt, %35, %36 : vector<8x1xi32>
    %38 = arith.subf %25, %31 : vector<8x1xf32>
    %cst_13 = arith.constant 0.000000e+00 : f32
    %39 = vector.broadcast %cst_13 : f32 to vector<8x1xf32>
    %40 = arith.select %37, %38, %39 : vector<8x1xi1>, vector<8x1xf32>
    %cst_14 = arith.constant dense<0.000000e+00> : vector<1xf32>
    %41 = vector.multi_reduction <add>, %40, %cst_14 [0] : vector<8x1xf32> to vector<1xf32>
    %42 = vector.shape_cast %41 : vector<1xf32> to vector<1x1xf32>
    %c0_15 = arith.constant 0 : index
    %c0_16 = arith.constant 0 : index
    %43 = vector.load %arg5[%c0_15, %c0_16] : memref<8x128xf32, #tpu.memory_space<vmem>>, vector<8x128xf32>
    tpu.vector_store %arg5[%c0_15, %c0_16], %16 {strides = array<i32>} : memref<8x128xf32, #tpu.memory_space<vmem>>, vector<8x128xf32>,
    %44 = vector.shape_cast %42 : vector<1x1xf32> to vector<1x1x1xf32>
    %c0_17 = arith.constant 0 : index
    %c0_18 = arith.constant 0 : index
    %c0_19 = arith.constant 0 : index
    %45 = vector.load %arg6[%c0_17, %c0_18, %c0_19] : memref<1x1x1xf32, #tpu.memory_space<vmem>>, vector<1x1x1xf32>
    tpu.vector_store %arg6[%c0_17, %c0_18, %c0_19], %44 {strides = array<i32>} : memref<1x1x1xf32, #tpu.memory_space<vmem>>, vector<1x1x1xf32>,
    return
  }
  func.func @transform_0(%arg0: i32) -> (i32, i32) {
    %c0_i32 = arith.constant 0 : i32
    %c0_i32_0 = arith.constant 0 : i32
    return %arg0, %c0_i32 : i32, i32
  }
  func.func @transform_1(%arg0: i32) -> (i32, i32) {
    %c0_i32 = arith.constant 0 : i32
    %c0_i32_0 = arith.constant 0 : i32
    %c0_i32_1 = arith.constant 0 : i32
    return %c0_i32, %c0_i32_0 : i32, i32
  }
  func.func @transform_2(%arg0: i32) -> (i32, i32) {
    %c0_i32 = arith.constant 0 : i32
    %c0_i32_0 = arith.constant 0 : i32
    %c0_i32_1 = arith.constant 0 : i32
    return %c0_i32, %c0_i32_0 : i32, i32
  }
  func.func @transform_3(%arg0: i32) -> (i32, i32) {
    %c0_i32 = arith.constant 0 : i32
    %c0_i32_0 = arith.constant 0 : i32
    %c0_i32_1 = arith.constant 0 : i32
    return %c0_i32, %c0_i32_0 : i32, i32
  }
  func.func @transform_4(%arg0: i32) -> (i32, i32) {
    %c0_i32 = arith.constant 0 : i32
    %c0_i32_0 = arith.constant 0 : i32
    return %arg0, %c0_i32 : i32, i32
  }
  func.func @transform_5(%arg0: i32) -> (i32, i32, i32) {
    %c0_i32 = arith.constant 0 : i32
    %c0_i32_0 = arith.constant 0 : i32
    %c0_i32_1 = arith.constant 0 : i32
    return %arg0, %c0_i32, %c0_i32_0 : i32, i32, i32
  }
}

</mosaic_0001>

<bundles_post_ra>
// kernel: tpu_custom_call.1
= control target key start
LH: loop header
LB: loop body
LE: loop exit
PB: predicated region body
PF: predicated region fallthrough
CT: control target
= control target key end

     0   :  { %11 = vsyncpa [#allocation3], 0  ;;  %s1458_s0 = inlined_call_operand.vmem [shape: s32[16,2], index: 0, kind: input, shape index: {}]   ;;  %s1459_s1 = inlined_call_operand.hbm [shape: bf16[128,128], index: 1, kind: input, shape index: {}]   ;;  %s1460_s2 = inlined_call_operand.hbm [shape: bf16[128,128], index: 2, kind: input, shape index: {}]   ;;  %s1461_s3 = inlined_call_operand.hbm [shape: bf16[128,128], index: 3, kind: input, shape index: {}]   ;;  %s1462_s4 = inlined_call_operand.hbm [shape: f32[16,128], index: 4, kind: output, shape index: {0}]   ;;  %s1463_s5 = inlined_call_operand.vmem [shape: f32[2,1,1], index: 5, kind: output, shape index: {1}]  }
   0x1   :  { %12 = vsyncpa [#allocation6], 0 }
   0x2   :  { %13 = vsyncpa [#allocation4], 0 }
   0x3   :  { %15 = vsyncpa [#allocation4 + $0x1], 0  ;;  %s1205_s18 = smov 0   ;;  %s1207_s19 = smov 0  }
   0x4   :  { %s1209_s20 = smov 0   ;;  %s1211_s21 = smov 0  }
   0x5 LB: > { %s1226_s22 = sadd.s32 4294967295, %s1162_s21   ;;  %s760_s23 = sadd.s32 4294967294, %s1162_s21   ;;  %s1162_s21 = sphi %s1211_s21, %s1486_s21   ;;  %s1158_s20 = sphi %s1209_s20, %s1485_s20   ;;  %s1154_s19 = sphi %s1207_s19, %s1484_s19   ;;  %s1150_s18 = sphi %s1205_s18, %s1483_s18  }
   0x6   : > { %s1230_s24 = sadd.s32 1, %s1162_s21   ;;  %s117_s25 = sadd.s32 1, %s1158_s20 }
   0x7   : > { %s114_s26 = ssub.s32 %s1162_s21, %s1230_s24  ;;  %p127_p0 = scmp.ne.s32.totalorder %s1158_s20, %s1154_s19 }
   0x8   : > { %p115_p1 = scmp.eq.s32.totalorder %s114_s26, 0  ;;  %p128_p2 = scmp.eq.s32.totalorder %s1226_s22, 1 }
   0x9   : > { %p133_p3 = scmp.ne.s32.totalorder %s1154_s19, %s1150_s18  ;;  %p134_p4 = scmp.eq.s32.totalorder %s760_s23, 1 }
   0xa   : > { %s1241_s27 = scalar_select %p115_p1, %s1158_s20, %s117_s25  }
   0xb   : > { %p1243_p5 = por %p128_p2, %p127_p0  ;;  %p1247_p6 = por %p134_p4, %p133_p3 }
   0xc   : > { %1467 = sst [smem:[#allocation12_spill]] %s1241_s27  ;;  %p761_p7 = scmp.ge.s32.totalorder %s1162_s21, 1 }
   0xd   : > { %s1468_s28 = scalar_select %p1243_p5, 1, 0 }
   0xe   : > { %s1469_s29 = scalar_select %p1247_p6, 1, 0 }
   0xf   : > { %p167_p8 = scmp.lt.s32.totalorder %s1162_s21, 3  ;;  %p1464_p9 = scmp.eq.s32.totalorder %s1226_s22, 0 }
  0x10   : > { %s1164_s6 = smov [#allocation5]   ;;  %s1165_s9 = smov [#allocation2]  }
  0x11   : > { %p1254_p10 = pnand %p761_p7, %p167_p8  ;;  %s192_s7 = sshll.u32 %s1164_s6, 4  ;;  %s1260_s7 = int_to_ptr.vmem [resolvable:$true] %s192_s7 }
  0x12   : > { %s179_s10 = sshll.u32 %s1165_s9, 4  ;;  %s1166_s11 = smov [#allocation7]   ;;  %s1268_s10 = int_to_ptr.vmem [resolvable:$true] %s179_s10 }
  0x13   : > { %s1470_s30 = scalar_select %p1254_p10, 1, 0 }
  0x14   : > { %p914_p11 = pneg %p1254_p10  ;;  %s1270_s12 = sshll.u32 %s1166_s11, 4  ;;  %s206_s12 = int_to_ptr.vmem [resolvable:$true] %s1270_s12 }
  0x15   : > { %s1008_s15 = scalar_lea.hbm %s1460_s2, 1024 }
  0x16   : > { %p1264_p12 = pnand %p1464_p9, %p914_p11  ;;  %p1009_p13 = scmp.ne.s32.totalorder %s1460_s2, %s1008_s15 }
  0x17   : > { %p1015_p3 = scmp.lt.u32.totalorder %s1008_s15, %s1460_s2 }
  0x18   : > { %p1280_p0 = pneg %p1264_p12 }
  0x1a   : > { %p1011_p1 = pnand %p1280_p0, %p1009_p13 }
  0x1c   : > { %p1012_p2 = pneg %p1011_p1 }
  0x1e   : > { %p1017_p4 = pnand %p1015_p3, %p1012_p2 }
  0x20   : > { %1020 = shalt.err (!%p1017_p4)
}
  0x21   : > { %s1021_s6 = scalar_lea.vmem %s1260_s7, 1024  ;;  %p1029_p9 = scmp.lt.s32.totalorder %s1260_s7, %s1260_s7 }
  0x22   : > { %p1022_p7 = scmp.ne.s32.totalorder %s1260_s7, %s1021_s6  ;;  %p1030_p6 = scmp.lt.s32.totalorder %s1021_s6, %s1021_s6 }
  0x24   : > { %p1024_p8 = pnand %p1022_p7, %p1280_p0  ;;  %p1031_p13 = por %p1030_p6, %p1029_p9 }
  0x26   : > { %p1025_p11 = pneg %p1024_p8 }
  0x28   : > { %p1032_p1 = pnand %p1031_p13, %p1025_p11 }
  0x2a   : > { %1035 = shalt.err (!%p1032_p1)
}
  0x2b   : > { %s1167_s9 = smov 64   ;;  %s1168_s11 = smov 4  }
  0x2c   : > { %920 = dma.hbm_to_vmem [thread:$0]  (!%p1264_p12), %s1460_s2, 1024, %s1260_s7, [#allocation6], %s1167_s9, %s1167_s9, %s1168_s11  }
  0x2d   : > { %s1036_s17 = scalar_lea.hbm %s1459_s1, 1024 }
  0x2e   : > { %p1037_p6 = scmp.ne.s32.totalorder %s1459_s1, %s1036_s17  ;;  %p1043_p3 = scmp.lt.u32.totalorder %s1036_s17, %s1459_s1 }
  0x30   : > { %p1039_p9 = pnand %p1037_p6, %p1280_p0 }
  0x32   : > { %p1040_p2 = pneg %p1039_p9 }
  0x34   : > { %p1045_p4 = pnand %p1043_p3, %p1040_p2 }
  0x36   : > { %1048 = shalt.err (!%p1045_p4)
}
  0x37   : > { %s1049_s7 = scalar_lea.vmem %s1268_s10, 1024  ;;  %p1057_p13 = scmp.lt.s32.totalorder %s1268_s10, %s1268_s10 }
  0x38   : > { %p1050_p7 = scmp.ne.s32.totalorder %s1268_s10, %s1049_s7  ;;  %p1058_p1 = scmp.lt.s32.totalorder %s1049_s7, %s1049_s7 }
  0x3a   : > { %p1052_p8 = pnand %p1050_p7, %p1280_p0  ;;  %p1059_p6 = por %p1058_p1, %p1057_p13 }
  0x3c   : > { %p1053_p11 = pneg %p1052_p8 }
  0x3e   : > { %p1060_p9 = pnand %p1059_p6, %p1053_p11 }
  0x40   : > { %1063 = shalt.err (!%p1060_p9)
}
  0x41   : > { %917 = dma.hbm_to_vmem [thread:$0]  (!%p1264_p12), %s1459_s1, 1024, %s1268_s10, [#allocation3], %s1167_s9, %s1167_s9, %s1168_s11  }
  0x42   : > { %s1064_s16 = scalar_lea.hbm %s1461_s3, 1024 }
  0x43   : > { %p1065_p2 = scmp.ne.s32.totalorder %s1461_s3, %s1064_s16  ;;  %p1071_p7 = scmp.lt.u32.totalorder %s1064_s16, %s1461_s3 }
  0x45   : > { %p1067_p3 = pnand %p1065_p2, %p1280_p0 }
  0x47   : > { %p1068_p4 = pneg %p1067_p3 }
  0x49   : > { %p1073_p8 = pnand %p1071_p7, %p1068_p4 }
  0x4b   : > { %1076 = shalt.err (!%p1073_p8)
}
  0x4c   : > { %s1077_s7 = scalar_lea.vmem %s206_s12, 1024  ;;  %p1085_p6 = scmp.lt.s32.totalorder %s206_s12, %s206_s12 }
  0x4d   : > { %p1078_p11 = scmp.ne.s32.totalorder %s206_s12, %s1077_s7  ;;  %p1086_p9 = scmp.lt.s32.totalorder %s1077_s7, %s1077_s7 }
  0x4f   : > { %p1080_p13 = pnand %p1078_p11, %p1280_p0  ;;  %p1087_p5 = por %p1086_p9, %p1085_p6 }
  0x51   : > { %p1081_p1 = pneg %p1080_p13 }
  0x53   : > { %p1088_p10 = pnand %p1087_p5, %p1081_p1 }
  0x55   : > { %1091 = shalt.err (!%p1088_p10)
}
  0x56   : > { %923 = dma.hbm_to_vmem [thread:$0]  (!%p1264_p12), %s1461_s3, 1024, %s206_s12, [#allocation6], %s1167_s9, %s1167_s9, %s1168_s11  }
  0x57   : > { %p1473_p2 = scmp.ne.s32.totalorder %s1470_s30, 0 }
  0x58   : > { %p1474_p0 = scmp.eq.s32.totalorder (!%p1473_p2), %s1226_s22, 0 }
  0x59   : > { %228 = sbr.rel (%p1473_p2) target bundleno = 813 (0x32d), region = 36 }
  0x60   : > { %1137 = dma.done.wait (%p1474_p0), [#allocation3], 1024   ;;  %p1475_p3 = pmov %p1474_p0 }
  0x61   : > { %p1476_p5 = pmov %p1474_p0 }
  0x62   : > { %1139 = vsyncadd (%p1475_p3), [#allocation3], 4294966272 }
  0x63   : > { %1141 = dma.done.wait (%p1476_p5), [#allocation6], 2048   ;;  %p1477_p10 = pmov %p1474_p0 }
  0x64   : > { %p266_p4 = scmp.lt.s32.totalorder %s1226_s22, 1  ;;  %v1169_v0 = vmov 0   ;;  %v1170_v1 = vmov 0.0   ;;  %v980_v3 = vld [vmem:[#allocation2] sm:$0xff]   ;;  %vm1171_vm0 = vmmov 0   ;;  %v982_v5 = vld [vmem:[#allocation2 + $0x8] sm:$0xff]   ;;  %v275_v20 = vlaneseq }
  0x65   : > { %1143 = vsyncadd (%p1477_p10), [#allocation6], 4294965248  ;;  %977 = vset.pattern.permute.xlu0 %v1169_v0  ;;  %855 = vmatprep.subr.bf16.mxu0 %v1170_v1  ;;  %v981_v4 = vld [vmem:[#allocation5] sm:$0xff]   ;;  %v983_v6 = vld [vmem:[#allocation5 + $0x8] sm:$0xff]   ;;  %v1172_v19 = vmov 1   ;;  %s258_s11 = sand.u32 1, %s1154_s19  }
  0x66   : > { %s1365_s30 = scalar_select %p266_p4, %s1226_s22, 1  ;;  %835 = vmatprep.subr.bf16.mxu1 %v1170_v1  ;;  %851 = vmatprep.mubr.msk.bf16.mxu1 %vm1171_vm0, %v1170_v1  ;;  %v984_v7 = vld [vmem:[#allocation2 + $0x10] sm:$0xff]   ;;  %v986_v9 = vld [vmem:[#allocation2 + $0x18] sm:$0xff]   ;;  %v988_v11 = vld [vmem:[#allocation2 + $0x20] sm:$0xff]   ;;  %v276_v21 = vand.u32 127, %v275_v20 }
  0x67   : > { %871 = vmatprep.mubr.msk.bf16.mxu0 %vm1171_vm0, %v1170_v1  ;;  %856 = vmatpush3.bf16.msra.mxu0 %v980_v3  ;;  %v985_v8 = vld [vmem:[#allocation5 + $0x10] sm:$0xff]   ;;  %v987_v10 = vld [vmem:[#allocation5 + $0x18] sm:$0xff]   ;;  %v989_v12 = vld [vmem:[#allocation5 + $0x20] sm:$0xff]   ;;  %v1173_v25 = vmov 1.0|1.0   ;;  %s770_s13 = sshll.u32 %s258_s11, 3 }
  0x68   : > { %s771_s8 = sshll.u32 %s1365_s30, 3  ;;  %836 = vmatpush3.bf16.msra.mxu1 %v981_v4  ;;  %857 = vmatprep.subr.bf16.mxu0 %v1170_v1  ;;  %v990_v13 = vld [vmem:[#allocation2 + $0x28] sm:$0xff]   ;;  %v992_v15 = vld [vmem:[#allocation2 + $0x30] sm:$0xff]   ;;  %v994_v17 = vld [vmem:[#allocation2 + $0x38] sm:$0xff]   ;;  %s260_s14 = scalar_lea.vmem [#allocation8], %s770_s13 }
  0x69   : > { %s269_s9 = scalar_lea.vmem %s1458_s0, %s771_s8  ;;  %837 = vmatprep.subr.bf16.mxu1 %v1170_v1  ;;  %v991_v14 = vld [vmem:[#allocation5 + $0x28] sm:$0xff]   ;;  %v993_v16 = vld [vmem:[#allocation5 + $0x30] sm:$0xff]   ;;  %v995_v18 = vld [vmem:[#allocation5 + $0x38] sm:$0xff]   ;;  %978 = vset.pattern.permute.xlu1 %v1172_v19  ;;  %s805_s15 = sshll.u32 %s1226_s22, 7 }
  0x6a   : > { %v274_v2 = vld [vmem:[%s269_s9] sm:$0xff]  ;;  %v997_v26 = vld [vmem:[#allocation7 + $0x8] sm:$0xff]   ;;  %v998_v27 = vld [vmem:[#allocation7 + $0x10] sm:$0xff]   ;;  %s648_s16 = sshll.u32 %s260_s14, 4  ;;  %s1416_s26 = scalar_lea.hbm %s1462_s4, %s805_s15  ;;  %s649_s16 = int_to_ptr.vmem [resolvable:$true] %s648_s16 }
  0x6b   : > { %278 = vperm.xlu0 %977, %v274_v2   ;;  %858 = vmatpush3.bf16.msra.mxu0 %v982_v5  ;;  %v996_v23 = vld [vmem:[#allocation7] sm:$0xff]   ;;  %v999_v28 = vld [vmem:[#allocation7 + $0x18] sm:$0xff]   ;;  %v1001_v30 = vld [vmem:[#allocation7 + $0x28] sm:$0xff]   ;;  %s632_s6 = scalar_lea.sflag [#allocation4], %s258_s11  ;;  %s1092_s7 = scalar_lea.vmem %s649_s16, 128 }
  0x6c   : > { %838 = vmatpush3.bf16.msra.mxu1 %v983_v6  ;;  %859 = vmatprep.subr.bf16.mxu0 %v1170_v1  ;;  %v1000_v29 = vld [vmem:[#allocation7 + $0x20] sm:$0xff]   ;;  %v1002_v31 = vld [vmem:[#allocation7 + $0x30] sm:$0xff]   ;;  %v1003_v32 = vld [vmem:[#allocation7 + $0x38] sm:$0xff]   ;;  %p1093_p12 = scmp.ne.s32.totalorder %s649_s16, %s1092_s7  ;;  %p1480_p7 = scmp.ne.s32.totalorder %s1468_s28, 0 }
  0x6d   : > { %839 = vmatprep.subr.bf16.mxu1 %v1170_v1  ;;  %608 = vperm.xlu1 %978, %v274_v2   ;;  %s1174_s10 = smov [#allocation8]  }
  0x6e   : > { %p1094_p8 = pnand %p1093_p12, %p1480_p7  ;;  %s1096_s27 = sshll.u32 %s1174_s10, 4  ;;  %s1097_s27 = int_to_ptr.vmem [resolvable:$false] %s1096_s27 }
  0x6f   : > { %860 = vmatpush3.bf16.msra.mxu0 %v984_v7  ;;  %979 = vset.pattern.permute.xlu0 %v1172_v19  ;;  %s1098_s8 = scalar_lea.vmem %s1097_s27, 256  ;;  %p1099_p13 = scmp.lt.s32.totalorder %s649_s16, %s1097_s27 }
  0x70   : > { %840 = vmatpush3.bf16.msra.mxu1 %v985_v8  ;;  %861 = vmatprep.subr.bf16.mxu0 %v1170_v1  ;;  %p1095_p11 = pneg %p1094_p8  ;;  %p1100_p1 = scmp.lt.s32.totalorder %s1098_s8, %s1092_s7 }
  0x71   : > { %841 = vmatprep.subr.bf16.mxu1 %v1170_v1 }
  0x72   : > { %p1101_p6 = por %p1100_p1, %p1099_p13 }
  0x73   : > { %862 = vmatpush3.bf16.msra.mxu0 %v986_v9 }
  0x74   : > { %842 = vmatpush3.bf16.msra.mxu1 %v987_v10  ;;  %863 = vmatprep.subr.bf16.mxu0 %v1170_v1  ;;  %p1102_p9 = pnand %p1101_p6, %p1095_p11 }
  0x75   : > { %843 = vmatprep.subr.bf16.mxu1 %v1170_v1 }
  0x77   : > { %864 = vmatpush3.bf16.msra.mxu0 %v988_v11 }
  0x78   : > { %844 = vmatpush3.bf16.msra.mxu1 %v989_v12  ;;  %865 = vmatprep.subr.bf16.mxu0 %v1170_v1 }
  0x79   : > { %845 = vmatprep.subr.bf16.mxu1 %v1170_v1 }
  0x7b   : > { %866 = vmatpush3.bf16.msra.mxu0 %v990_v13 }
  0x7c   : > { %846 = vmatpush3.bf16.msra.mxu1 %v991_v14  ;;  %867 = vmatprep.subr.bf16.mxu0 %v1170_v1 }
  0x7d   : > { %847 = vmatprep.subr.bf16.mxu1 %v1170_v1 }
  0x7f   : > { %868 = vmatpush3.bf16.msra.mxu0 %v992_v15 }
  0x80   : > { %848 = vmatpush3.bf16.msra.mxu1 %v993_v16  ;;  %869 = vmatprep.subr.bf16.mxu0 %v1170_v1 }
  0x81   : > { %849 = vmatprep.subr.bf16.mxu1 %v1170_v1 }
  0x83   : > { %870 = vmatpush3.bf16.msra.mxu0 %v994_v17 }
  0x84   : > { %850 = vmatpush3.bf16.msra.mxu1 %v995_v18  ;;  %875 = vmatprep.subr.bf16.mxu0 %v1170_v1 }
  0xea   : > { %v279_v22 = vpop.permute.xlu0 %278 }
  0xeb   : > { %vm280_vm1 = vcmp.eq.s32.totalorder %v276_v21, %v279_v22 }
  0xec   : > { %vm1392_vm2 = vmpackc.low %vm280_vm1, %vm280_vm1  ;;  %v609_v38 = vpop.permute.xlu1 %608 }
  0xed   : > { %852 = vmatmul.mubr.msk.bf16.vlgmr.msra.gmra.mrb[0].mxu1 %vm1392_vm2, %v1173_v25  ;;  %872 = vmatmul.mubr.msk.bf16.vlgmr.msra.gmra.mrb[0].mxu0 %vm1392_vm2, %v1173_v25  ;;  %vm610_vm3 = vcmp.eq.s32.totalorder %v276_v21, %v609_v38 }
  0xee   : > { %876 = vmatpush3.bf16.msra.mxu0 %v996_v23  ;;  %891 = vmatprep.mubr.msk.bf16.mxu0 %vm1171_vm0, %v1170_v1 }
  0xef   : > { %877 = vmatprep.subr.bf16.mxu0 %v1170_v1 }
  0xf2   : > { %878 = vmatpush3.bf16.msra.mxu0 %v997_v26 }
  0xf3   : > { %879 = vmatprep.subr.bf16.mxu0 %v1170_v1 }
  0xf6   : > { %880 = vmatpush3.bf16.msra.mxu0 %v998_v27 }
  0xf7   : > { %881 = vmatprep.subr.bf16.mxu0 %v1170_v1 }
  0xfa   : > { %882 = vmatpush3.bf16.msra.mxu0 %v999_v28 }
  0xfb   : > { %883 = vmatprep.subr.bf16.mxu0 %v1170_v1 }
  0xfe   : > { %884 = vmatpush3.bf16.msra.mxu0 %v1000_v29 }
  0xff   : > { %885 = vmatprep.subr.bf16.mxu0 %v1170_v1 }
 0x102   : > { %886 = vmatpush3.bf16.msra.mxu0 %v1001_v30 }
 0x103   : > { %887 = vmatprep.subr.bf16.mxu0 %v1170_v1 }
 0x106   : > { %888 = vmatpush3.bf16.msra.mxu0 %v1002_v31 }
 0x107   : > { %889 = vmatprep.subr.bf16.mxu0 %v1170_v1 }
 0x10a   : > { %890 = vmatpush3.bf16.msra.mxu0 %v1003_v32 }
 0x10d   : > { %892 = vmatmul.mubr.msk.bf16.vlgmr.msra.gmra.mrb[0].mxu0 %vm1392_vm2, %v1173_v25 }
 0x1c0   : > { %v398_v33 = vpop.f32.mrb[0].mxu1 }
 0x1c1   : > { %v853_v34 = vpop.f32.mrb[1].mxu1 }
 0x1c2   : > { %v401_v35 = vpop.f32.mrb[2].mxu1 }
 0x1c3   : > { %v854_v36 = vpop.f32.mrb[3].mxu1 }
 0x1e0   : > { %v590_v37 = vpop.f32.mrb[0].mxu0 }
 0x1e1   : > { %v895_v39 = vadd.f32 %v590_v37, %v398_v33  ;;  %v893_v40 = vpop.f32.mrb[1].mxu0 }
 0x1e2   : > { %v593_v41 = vpop.f32.mrb[2].mxu0 }
 0x1e3   : > { %v894_v42 = vpop.f32.mrb[3].mxu0  ;;  %597 = vmax.xlane.f32.xlu0 %v895_v39  ;;  %628 = vst [vmem:[%s260_s14] sm:$0xff] %v895_v39  ;;  %v611_v43 = vsel %vm610_vm3, %v895_v39, 0.0 }
 0x1e7   : > { %612 = vadd.xlane.f32.xlu0 %v611_v43 }
 0x270   : > { %v598_v44 = vpop.xlane.xlu0 %597 }
 0x271   : > { %v599_v45 = vsub.f32 %v895_v39, %v598_v44 }
 0x273   : > { %v600_v46 = vmul.f32 1.442695, %v599_v45 }
 0x275   : > { %1004 = vpow2.f32 %v600_v46 }
 0x27f   : > { %v1005_v47 = vpop.eup %1004 }
 0x280   : > { %602 = vadd.xlane.f32.xlu1 %v1005_v47 }
 0x281   : > { %1105 = shalt.err (!%p1102_p9)
}
 0x282   : > { %s1106_s12 = scalar_lea.hbm %s1416_s26, 128  ;;  %s1110_s11 = scalar_lea.hbm %s1462_s4, 256 }
 0x283   : > { %p1107_p2 = scmp.ne.s32.totalorder %s1416_s26, %s1106_s12  ;;  %p1111_p5 = scmp.lt.u32.totalorder %s1416_s26, %s1462_s4 }
 0x284   : > { %p1112_p10 = scmp.lt.u32.totalorder %s1110_s11, %s1106_s12  ;;  %p1114_p12 = scmp.lt.u32.totalorder %s1106_s12, %s1416_s26 }
 0x285   : > { %p1108_p0 = pnand %p1107_p2, %p1480_p7 }
 0x286   : > { %p1113_p4 = por %p1112_p10, %p1111_p5 }
 0x287   : > { %p1109_p3 = pneg %p1108_p0 }
 0x288   : > { %p1115_p8 = por %p1114_p12, %p1113_p4 }
 0x28a   : > { %p1116_p11 = pnand %p1115_p8, %p1109_p3 }
 0x28c   : > { %1119 = shalt.err (!%p1116_p11)
}
 0x28d   : > { %912 = dma.vmem_to_hbm [thread:$0]  (%p1480_p7), %s649_s16, 128, %s1416_s26, %s632_s6   ;;  %v616_v49 = vshrl.u32 %v275_v20, 7  ;;  %v613_v55 = vpop.xlane.xlu0 %612  ;;  %vm629_vm5 = vcmask 0  }
 0x28e   : > { %s803_s15 = sshll.u32 %s1226_s22, 3  ;;  %s272_s22 = scalar_lea.vmem %s1463_s5, %s1365_s30 }
 0x28f   : > { %v617_v50 = vstv %s803_s15 }
 0x290   : > { %v618_v52 = vadd.s32 %v617_v50, %v616_v49 }
 0x292   : > { %vm619_vm4 = vcmp.lt.s32.totalorder %v618_v52, 16 }
 0x30d   : > { %v603_v48 = vpop.xlane.xlu1 %602 }
 0x30e   : > { %1006 = vlog2.f32 %v603_v48 }
 0x318   : > { %v1007_v51 = vpop.eup %1006 }
 0x319   : > { %v605_v53 = vmul.f32 0.6931472, %v1007_v51 }
 0x31b   : > { %v606_v54 = vadd.f32 %v605_v53, %v598_v44 }
 0x31d   : > { %v620_v56 = vsub.f32 %v606_v54, %v613_v55 }
 0x31f   : > { %v621_v57 = vsel %vm619_vm4, %v620_v56, 0.0 }
 0x320   : > { %v622_v58 = vrot.slane %v621_v57, 4 }
 0x322   : > { %v623_v59 = vadd.f32 %v622_v58, %v621_v57 }
 0x324   : > { %v624_v60 = vrot.slane %v623_v59, 2 }
 0x326   : > { %v625_v61 = vadd.f32 %v624_v60, %v623_v59 }
 0x328   : > { %v626_v62 = vrot.slane %v625_v61, 1 }
 0x32a   : > { %v627_v63 = vadd.f32 %v626_v62, %v625_v61 }
 0x32c   : > { %630 = vst.msk [vmem:[%s272_s22] sm:$0x1] %vm629_vm5, %v627_v63 }
 0x32d PF: > { %p934_p7 = scmp.ge.s32.totalorder %s1162_s21, 2  ;;  %s663_s17 = sand.u32 1, %s1150_s18  }
 0x32e   : > { %p1481_p13 = scmp.ne.s32.totalorder %s1469_s29, 0  ;;  %s664_s25 = scalar_lea.sflag [#allocation4], %s663_s17 }
 0x330   : > { %p925_p1 = pnand %p934_p7, %p1481_p13 }
 0x332   : > { %1145 = dma.done.wait (!%p925_p1), %s664_s25, 128  }
 0x333   : > { %1147 = vsyncadd (!%p925_p1), %s664_s25, 4294967168  ;;  %s1482_s26 = sld [smem:[#allocation12_spill]]  ;;  %p18_p6 = scmp.ge.s32.totalorder %s1230_s24, 4  }
 0x334   : > { %s1483_s18 = smov %s1154_s19  ;;  %s1484_s19 = smov %s1158_s20 }
 0x335   : > { %s1486_s21 = smov %s1230_s24  ;;  %20 = sbr.rel (!%p18_p6) target bundleno = 5 (0x5), region = 96 }
 0x339   : > { %s1485_s20 = smov %s1482_s26 }
 0x33c   :  { %675 = vsyncpa [#allocation3], 1 }
 0x33d   :  { %677 = vsyncpa [#allocation3 + $0x1], 1 }
 0x33e   :  { %678 = vsyncpa [#allocation6], 1 }
 0x33f   :  { %679 = vsyncpa [#allocation4], 1 }
 0x340   :  { %681 = vsyncpa [#allocation4 + $0x1], 1 }

</bundles_post_ra>
